<compile_context>
chip_gen: v6e
topology: v6e:2x2x1
jax: 0.10.0
libtpu: 0.0.40
codegen_flags: <defaults>
</compile_context>

<pallas_src>
import jax
import jax.numpy as jnp
from jax.experimental import pallas as pl
from jax.experimental.pallas import tpu as pltpu

_LANE = 128


def _cdiv(a, b):
    return (a + b - 1) // b


def _round_up(a, b):
    return _cdiv(a, b) * b


def _mlp_kernel(x_ref,
                w1_ref, b1_ref,
                w2_ref, b2_ref,
                w3_ref, b3_ref,
                w4_ref, b4_ref,
                o_ref):
    # Transposed layout: batch on the lane axis.
    #   x_ref : (7, tile_b)     bf16
    #   w1    : (128, 7)  bf16   b1 : (128, 1) f32
    #   w2    : (64, 128) bf16   b2 : (64, 1)  f32
    #   w3    : (32, 64)  bf16   b3 : (32, 1)  f32
    #   w4    : (32, 1)   f32    b4 : (1, 1)   f32
    #   o_ref : (1, tile_b)      f32
    x = x_ref[...]

    h = jnp.dot(w1_ref[...], x, preferred_element_type=jnp.float32) + b1_ref[...]
    h = jnp.maximum(h, 0.0)

    h = jnp.dot(w2_ref[...], h.astype(jnp.bfloat16),
                preferred_element_type=jnp.float32) + b2_ref[...]
    h = jnp.maximum(h, 0.0)

    h = jnp.dot(w3_ref[...], h.astype(jnp.bfloat16),
                preferred_element_type=jnp.float32) + b3_ref[...]
    h = jnp.maximum(h, 0.0)

    # Final layer has out_features=1: an N=1 MXU matmul wastes a full MXU pass,
    # so use VPU multiply + sublane reduce (XLU) instead. h: (32, tile_b).
    out = jnp.sum(h * w4_ref[...], axis=0, keepdims=True) + b4_ref[...]
    o_ref[...] = out.astype(o_ref.dtype)


def calories_model_forward(x, params, *, tile_b=512, min_batch_for_pallas=128):
    """x: (B, 7) float32. params: torch-convention weights (out, in), biases (out,).

    Returns (B, 1) float32.
    """
    B, F = x.shape
    assert F == 7

    # Tiny batches: fixed pallas_call / DMA overhead dwarfs the compute.
    if B < min_batch_for_pallas:
        return reference_forward(x, params)

    # One-time weight prep: bf16 for the MXU layers, f32 column for the final
    # VPU-reduce layer, biases as (out, 1) so they broadcast over lanes.
    w1 = params["w1"].astype(jnp.bfloat16)        # (128, 7)
    w2 = params["w2"].astype(jnp.bfloat16)        # (64, 128)
    w3 = params["w3"].astype(jnp.bfloat16)        # (32, 64)
    w4 = params["w4"].T.astype(jnp.float32)       # (32, 1)
    b1 = params["b1"].reshape(-1, 1)              # (128, 1)
    b2 = params["b2"].reshape(-1, 1)              # (64, 1)
    b3 = params["b3"].reshape(-1, 1)              # (32, 1)
    b4 = params["b4"].reshape(1, 1)               # (1, 1)

    # Batch tile: multiple of 128 lanes, capped at tile_b rows, and shrunk so
    # the grid has >= 2 steps when possible (megacore sharding on v7x).
    lane_tiles = _cdiv(B, _LANE)
    tiles_per_step = max(1, min(tile_b // _LANE, _cdiv(lane_tiles, 2)))
    eff_tile = tiles_per_step * _LANE
    b_pad = _round_up(B, eff_tile)
    grid = (b_pad // eff_tile,)

    # Pad the batch with zeros, cast to bf16, transpose so batch is the lane axis.
    x_pad = jnp.pad(x, ((0, b_pad - B), (0, 0)))
    x_t = x_pad.astype(jnp.bfloat16).T            # (7, b_pad)

    def full(shape):
        return pl.BlockSpec(shape, lambda i: (0, 0))

    out_t = pl.pallas_call(
        _mlp_kernel,
        out_shape=jax.ShapeDtypeStruct((1, b_pad), jnp.float32),
        grid_spec=pltpu.PrefetchScalarGridSpec(
            num_scalar_prefetch=0,
            grid=grid,
            in_specs=[
                pl.BlockSpec((7, eff_tile), lambda i: (0, i)),
                full(w1.shape), full(b1.shape),
                full(w2.shape), full(b2.shape),
                full(w3.shape), full(b3.shape),
                full(w4.shape), full(b4.shape),
            ],
            out_specs=pl.BlockSpec((1, eff_tile), lambda i: (0, i)),
        ),
        compiler_params=pltpu.CompilerParams(
            dimension_semantics=("parallel",)),
    )(x_t, w1, b1, w2, b2, w3, b3, w4, b4)

    return out_t[0, :B].reshape(B, 1)


def init_params(key):
    """Deterministic init mimicking nn.Linear (uniform +-1/sqrt(fan_in)), torch shapes."""
    dims = [7, 128, 64, 32, 1]
    params = {}
    for idx, (din, dout) in enumerate(zip(dims[:-1], dims[1:]), start=1):
        key, kw, kb = jax.random.split(key, 3)
        bound = 1.0 / jnp.sqrt(float(din))
        params[f"w{idx}"] = jax.random.uniform(
            kw, (dout, din), jnp.float32, minval=-bound, maxval=bound)
        params[f"b{idx}"] = jax.random.uniform(
            kb, (dout,), jnp.float32, minval=-bound, maxval=bound)
    return params


def reference_forward(x, params):
    h = jnp.maximum(x @ params["w1"].T + params["b1"], 0.0)
    h = jnp.maximum(h @ params["w2"].T + params["b2"], 0.0)
    h = jnp.maximum(h @ params["w3"].T + params["b3"], 0.0)
    return h @ params["w4"].T + params["b4"]


if __name__ == "__main__":
    key = jax.random.PRNGKey(0)
    kx, kp = jax.random.split(key)

    B = 256  # 2 lane-tiles of 128 -> 2 grid steps (exercises pipelining / megacore)
    x = jax.random.normal(kx, (B, 7), dtype=jnp.float32)
    params = init_params(kp)

    out = calories_model_forward(x, params)
    out = jax.block_until_ready(out)

    ref = reference_forward(x, params)
    assert out.shape == (B, 1)
    # bf16 matmul operands with f32 accumulation -> loosened tolerance vs f32 ref.
    err = float(jnp.max(jnp.abs(out - ref)))
    assert jnp.allclose(out, ref, atol=5e-2, rtol=5e-2), f"mismatch vs reference (max abs err {err})"

    print("KERNEL_OK")
</pallas_src>

<mosaic_0001>
module attributes {stable_mosaic.version = 11 : i64} {
  func.func @_mlp_kernel(%arg0: i32, %arg1: memref<7x128xbf16, #tpu.memory_space<vmem>>, %arg2: memref<128x7xbf16, #tpu.memory_space<vmem>>, %arg3: memref<128x1xf32, #tpu.memory_space<vmem>>, %arg4: memref<64x128xbf16, #tpu.memory_space<vmem>>, %arg5: memref<64x1xf32, #tpu.memory_space<vmem>>, %arg6: memref<32x64xbf16, #tpu.memory_space<vmem>>, %arg7: memref<32x1xf32, #tpu.memory_space<vmem>>, %arg8: memref<32x1xf32, #tpu.memory_space<vmem>>, %arg9: memref<1x1xf32, #tpu.memory_space<vmem>>, %arg10: memref<1x128xf32, #tpu.memory_space<vmem>>) attributes {dimension_semantics = [#tpu.dimension_semantics<parallel>], iteration_bounds = array<i64: 2>, scalar_prefetch = 0 : i64, scratch_operands = 0 : i64, tpu.core_type = #tpu.core_type<tc>, window_params = [{transform_indices = @transform_0, window_bounds = array<i64: 7, 128>}, {pipeline_mode = #tpu.pipeline_mode<synchronous>, transform_indices = @transform_1, window_bounds = array<i64: 128, 7>}, {pipeline_mode = #tpu.pipeline_mode<synchronous>, transform_indices = @transform_2, window_bounds = array<i64: 128, 1>}, {pipeline_mode = #tpu.pipeline_mode<synchronous>, transform_indices = @transform_3, window_bounds = array<i64: 64, 128>}, {pipeline_mode = #tpu.pipeline_mode<synchronous>, transform_indices = @transform_4, window_bounds = array<i64: 64, 1>}, {pipeline_mode = #tpu.pipeline_mode<synchronous>, transform_indices = @transform_5, window_bounds = array<i64: 32, 64>}, {pipeline_mode = #tpu.pipeline_mode<synchronous>, transform_indices = @transform_6, window_bounds = array<i64: 32, 1>}, {pipeline_mode = #tpu.pipeline_mode<synchronous>, transform_indices = @transform_7, window_bounds = array<i64: 32, 1>}, {pipeline_mode = #tpu.pipeline_mode<synchronous>, transform_indices = @transform_8, window_bounds = array<i64: 1, 1>}, {transform_indices = @transform_9, window_bounds = array<i64: 1, 128>}]} {
    %c0 = arith.constant 0 : index
    %c0_0 = arith.constant 0 : index
    %0 = vector.load %arg1[%c0, %c0_0] : memref<7x128xbf16, #tpu.memory_space<vmem>>, vector<7x128xbf16>
    %c0_1 = arith.constant 0 : index
    %c0_2 = arith.constant 0 : index
    %1 = vector.load %arg2[%c0_1, %c0_2] : memref<128x7xbf16, #tpu.memory_space<vmem>>, vector<128x7xbf16>
    %cst = arith.constant dense<0.000000e+00> : vector<128x128xf32>
    %2 = tpu.matmul %1, %0, %cst {dimension_numbers = #tpu.dot_dimension_numbers<[1], [0], [0], [1], [0, 0, 1, 1], [], []>} : vector<128x7xbf16>, vector<7x128xbf16>, vector<128x128xf32> -> vector<128x128xf32>
    %c0_3 = arith.constant 0 : index
    %c0_4 = arith.constant 0 : index
    %3 = vector.load %arg3[%c0_3, %c0_4] : memref<128x1xf32, #tpu.memory_space<vmem>>, vector<128x1xf32>
    %4 = vector.broadcast %3 : vector<128x1xf32> to vector<128x128xf32>
    %5 = arith.addf %2, %4 : vector<128x128xf32>
    %cst_5 = arith.constant 0.000000e+00 : f32
    %6 = vector.broadcast %cst_5 : f32 to vector<128x128xf32>
    %7 = arith.maximumf %5, %6 : vector<128x128xf32>
    %c0_6 = arith.constant 0 : index
    %c0_7 = arith.constant 0 : index
    %8 = vector.load %arg4[%c0_6, %c0_7] : memref<64x128xbf16, #tpu.memory_space<vmem>>, vector<64x128xbf16>
    %9 = arith.truncf %7 : vector<128x128xf32> to vector<128x128xbf16>
    %cst_8 = arith.constant dense<0.000000e+00> : vector<64x128xf32>
    %10 = tpu.matmul %8, %9, %cst_8 {dimension_numbers = #tpu.dot_dimension_numbers<[1], [0], [0], [1], [0, 0, 1, 1], [], []>} : vector<64x128xbf16>, vector<128x128xbf16>, vector<64x128xf32> -> vector<64x128xf32>
    %c0_9 = arith.constant 0 : index
    %c0_10 = arith.constant 0 : index
    %11 = vector.load %arg5[%c0_9, %c0_10] : memref<64x1xf32, #tpu.memory_space<vmem>>, vector<64x1xf32>
    %12 = vector.broadcast %11 : vector<64x1xf32> to vector<64x128xf32>
    %13 = arith.addf %10, %12 : vector<64x128xf32>
    %cst_11 = arith.constant 0.000000e+00 : f32
    %14 = vector.broadcast %cst_11 : f32 to vector<64x128xf32>
    %15 = arith.maximumf %13, %14 : vector<64x128xf32>
    %c0_12 = arith.constant 0 : index
    %c0_13 = arith.constant 0 : index
    %16 = vector.load %arg6[%c0_12, %c0_13] : memref<32x64xbf16, #tpu.memory_space<vmem>>, vector<32x64xbf16>
    %17 = arith.truncf %15 : vector<64x128xf32> to vector<64x128xbf16>
    %cst_14 = arith.constant dense<0.000000e+00> : vector<32x128xf32>
    %18 = tpu.matmul %16, %17, %cst_14 {dimension_numbers = #tpu.dot_dimension_numbers<[1], [0], [0], [1], [0, 0, 1, 1], [], []>} : vector<32x64xbf16>, vector<64x128xbf16>, vector<32x128xf32> -> vector<32x128xf32>
    %c0_15 = arith.constant 0 : index
    %c0_16 = arith.constant 0 : index
    %19 = vector.load %arg7[%c0_15, %c0_16] : memref<32x1xf32, #tpu.memory_space<vmem>>, vector<32x1xf32>
    %20 = vector.broadcast %19 : vector<32x1xf32> to vector<32x128xf32>
    %21 = arith.addf %18, %20 : vector<32x128xf32>
    %cst_17 = arith.constant 0.000000e+00 : f32
    %22 = vector.broadcast %cst_17 : f32 to vector<32x128xf32>
    %23 = arith.maximumf %21, %22 : vector<32x128xf32>
    %c0_18 = arith.constant 0 : index
    %c0_19 = arith.constant 0 : index
    %24 = vector.load %arg8[%c0_18, %c0_19] : memref<32x1xf32, #tpu.memory_space<vmem>>, vector<32x1xf32>
    %25 = vector.broadcast %24 : vector<32x1xf32> to vector<32x128xf32>
    %26 = arith.mulf %23, %25 : vector<32x128xf32>
    %cst_20 = arith.constant dense<0.000000e+00> : vector<128xf32>
    %27 = vector.multi_reduction <add>, %26, %cst_20 [0] : vector<32x128xf32> to vector<128xf32>
    %28 = vector.shape_cast %27 : vector<128xf32> to vector<1x128xf32>
    %c0_21 = arith.constant 0 : index
    %c0_22 = arith.constant 0 : index
    %29 = vector.load %arg9[%c0_21, %c0_22] : memref<1x1xf32, #tpu.memory_space<vmem>>, vector<1x1xf32>
    %30 = vector.broadcast %29 : vector<1x1xf32> to vector<1x128xf32>
    %31 = arith.addf %28, %30 : vector<1x128xf32>
    %c0_23 = arith.constant 0 : index
    %c0_24 = arith.constant 0 : index
    %32 = vector.load %arg10[%c0_23, %c0_24] : memref<1x128xf32, #tpu.memory_space<vmem>>, vector<1x128xf32>
    tpu.vector_store %arg10[%c0_23, %c0_24], %31 {strides = array<i32>} : memref<1x128xf32, #tpu.memory_space<vmem>>, vector<1x128xf32>,
    return
  }
  func.func @transform_0(%arg0: i32) -> (i32, i32) {
    %c0_i32 = arith.constant 0 : i32
    %c0_i32_0 = arith.constant 0 : i32
    return %c0_i32, %arg0 : i32, i32
  }
  func.func @transform_1(%arg0: i32) -> (i32, i32) {
    %c0_i32 = arith.constant 0 : i32
    %c0_i32_0 = arith.constant 0 : i32
    %c0_i32_1 = arith.constant 0 : i32
    return %c0_i32, %c0_i32_0 : i32, i32
  }
  func.func @transform_2(%arg0: i32) -> (i32, i32) {
    %c0_i32 = arith.constant 0 : i32
    %c0_i32_0 = arith.constant 0 : i32
    %c0_i32_1 = arith.constant 0 : i32
    return %c0_i32, %c0_i32_0 : i32, i32
  }
  func.func @transform_3(%arg0: i32) -> (i32, i32) {
    %c0_i32 = arith.constant 0 : i32
    %c0_i32_0 = arith.constant 0 : i32
    %c0_i32_1 = arith.constant 0 : i32
    return %c0_i32, %c0_i32_0 : i32, i32
  }
  func.func @transform_4(%arg0: i32) -> (i32, i32) {
    %c0_i32 = arith.constant 0 : i32
    %c0_i32_0 = arith.constant 0 : i32
    %c0_i32_1 = arith.constant 0 : i32
    return %c0_i32, %c0_i32_0 : i32, i32
  }
  func.func @transform_5(%arg0: i32) -> (i32, i32) {
    %c0_i32 = arith.constant 0 : i32
    %c0_i32_0 = arith.constant 0 : i32
    %c0_i32_1 = arith.constant 0 : i32
    return %c0_i32, %c0_i32_0 : i32, i32
  }
  func.func @transform_6(%arg0: i32) -> (i32, i32) {
    %c0_i32 = arith.constant 0 : i32
    %c0_i32_0 = arith.constant 0 : i32
    %c0_i32_1 = arith.constant 0 : i32
    return %c0_i32, %c0_i32_0 : i32, i32
  }
  func.func @transform_7(%arg0: i32) -> (i32, i32) {
    %c0_i32 = arith.constant 0 : i32
    %c0_i32_0 = arith.constant 0 : i32
    %c0_i32_1 = arith.constant 0 : i32
    return %c0_i32, %c0_i32_0 : i32, i32
  }
  func.func @transform_8(%arg0: i32) -> (i32, i32) {
    %c0_i32 = arith.constant 0 : i32
    %c0_i32_0 = arith.constant 0 : i32
    %c0_i32_1 = arith.constant 0 : i32
    return %c0_i32, %c0_i32_0 : i32, i32
  }
  func.func @transform_9(%arg0: i32) -> (i32, i32) {
    %c0_i32 = arith.constant 0 : i32
    %c0_i32_0 = arith.constant 0 : i32
    return %c0_i32, %arg0 : i32, i32
  }
}

</mosaic_0001>

<bundles_post_ra>
// kernel: tpu_custom_call.1
= control target key start
LH: loop header
LB: loop body
LE: loop exit
PB: predicated region body
PF: predicated region fallthrough
CT: control target
= control target key end

     0   :  { %s1540_s0 = inlined_call_operand.vmem [shape: bf16[7,256], index: 0, kind: input, shape index: {}]   ;;  %s1541_s1 = inlined_call_operand.vmem [shape: bf16[128,7], index: 1, kind: input, shape index: {}]   ;;  %s1542_s2 = inlined_call_operand.vmem [shape: f32[128,1], index: 2, kind: input, shape index: {}]   ;;  %s1543_s3 = inlined_call_operand.vmem [shape: bf16[64,128], index: 3, kind: input, shape index: {}]   ;;  %s1544_s4 = inlined_call_operand.vmem [shape: f32[64,1], index: 4, kind: input, shape index: {}]   ;;  %s1545_s5 = inlined_call_operand.vmem [shape: bf16[32,64], index: 5, kind: input, shape index: {}]   ;;  %s1546_s6 = inlined_call_operand.vmem [shape: f32[32,1], index: 6, kind: input, shape index: {}]   ;;  %s1547_s7 = inlined_call_operand.vmem [shape: f32[32,1], index: 7, kind: input, shape index: {}]   ;;  %s1548_s8 = inlined_call_operand.<no memory space> [shape: f32[1,1], index: 8, kind: input, shape index: {}]   ;;  %s1549_s9 = inlined_call_operand.hbm [shape: f32[1,256], index: 9, kind: output, shape index: {}]  }
   0x1   :  { %v14_v0 = vstv %s1548_s8 }
   0x2   :  { %15 = vst [vmem:[#allocation2] sm:$0x1] %v14_v0 }
   0x3   :  { %16 = vsyncpa [#allocation4], 0 }
   0x4   :  { %18 = vsyncpa [#allocation4 + $0x1], 0  ;;  %s1296_s11 = smov 0   ;;  %s1298_s12 = smov 0  }
   0x5   :  { %s1300_s13 = smov 0   ;;  %s1302_s14 = smov 0  }
   0x6 LB: > { %s1317_s8 = sadd.s32 4294967295, %s1238_s14   ;;  %s1008_s15 = sadd.s32 4294967294, %s1238_s14   ;;  %s1238_s14 = sphi %s1302_s14, %s1555_s14   ;;  %s1234_s13 = sphi %s1300_s13, %s1554_s13   ;;  %s1230_s12 = sphi %s1298_s12, %s1553_s12   ;;  %s1226_s11 = sphi %s1296_s11, %s1552_s11  }
   0x7   : > { %s1321_s16 = sadd.s32 1, %s1238_s14   ;;  %s225_s17 = sadd.s32 1, %s1234_s13 }
   0x8   : > { %s222_s18 = ssub.s32 %s1238_s14, %s1321_s16  ;;  %p235_p0 = scmp.ne.s32.totalorder %s1234_s13, %s1230_s12 }
   0x9   : > { %p223_p1 = scmp.eq.s32.totalorder %s222_s18, 0  ;;  %p236_p2 = scmp.eq.s32.totalorder %s1317_s8, 1 }
   0xa   : > { %p241_p3 = scmp.ne.s32.totalorder %s1230_s12, %s1226_s11  ;;  %p242_p4 = scmp.eq.s32.totalorder %s1008_s15, 1 }
   0xb   : > { %s1332_s19 = scalar_select %p223_p1, %s1234_s13, %s225_s17  }
   0xc   : > { %p1334_p5 = por %p236_p2, %p235_p0  ;;  %p1338_p6 = por %p242_p4, %p241_p3 }
   0xd   : > { %p1011_p7 = scmp.ge.s32.totalorder %s1238_s14, 1  ;;  %p291_p8 = scmp.lt.s32.totalorder %s1238_s14, 3 }
   0xf   : > { %p292_p9 = pnand %p1011_p7, %p291_p8 }
  0x10   : > { %p325_p10 = scmp.lt.s32.totalorder (!%p292_p9), %s1317_s8, 1  ;;  %s1037_s29 = sshll.u32 (!%p292_p9), %s1317_s8, 4 }
  0x11   : > { %295 = sbr.rel (%p292_p9) target bundleno = 757 (0x2f5), region = 56  ;;  %s951_s18 = scalar_lea.hbm (!%p292_p9), %s1549_s9, %s1037_s29 }
  0x16   : > { %vm508_vm0 = vcmask 1042432   ;;  %vm509_vm1 = vcmask 1043456   ;;  %v1240_v1 = vmov 65535   ;;  %v1164_v3 = vld [vmem:[%s1541_s1] sm:$0xff]   ;;  %vm483_vm2 = vcmask 56320   ;;  %s326_s24 = scalar_select %p325_p10, %s1317_s8, 1 }
  0x17   : > { %v510_v2 = vsel %vm508_vm0, 4294967295, %v1240_v1  ;;  %1069 = vmatprep.mubr.msk.bf16.mxu0 %vm483_vm2, %v1164_v3  ;;  %v1241_v5 = vmov 0   ;;  %v1165_v8 = vld [vmem:[%s1541_s1 + $0x8] sm:$0xff]   ;;  %v361_v9 = vld [vmem:[%s1542_s2 + $0x70] sm:$0xff]  ;;  %v359_v11 = vld [vmem:[%s1542_s2 + $0x60] sm:$0xff]  ;;  %vm831_vm3 = vcmask 523264  }
  0x18   : > { %s1012_s25 = sshll.u32 %s326_s24, 2  ;;  %v511_v4 = vsel %vm509_vm1, %v510_v2, 0  ;;  %1162 = vset.pattern.permute.xlu0 %v1241_v5  ;;  %1163 = vset.pattern.permute.xlu1 %v1241_v5  ;;  %v1166_v10 = vld [vmem:[%s1541_s1 + $0x10] sm:$0xff]   ;;  %v362_v12 = vld [vmem:[%s1542_s2 + $0x78] sm:$0xff]  ;;  %v360_v13 = vld [vmem:[%s1542_s2 + $0x68] sm:$0xff]  ;;  %s1242_s24 = smov [#allocation3]  }
  0x19   : > { %s328_s28 = scalar_lea.vmem %s1540_s0, %s1012_s25  ;;  %435 = vperm.xlu0 %1162, %v361_v9   ;;  %425 = vperm.xlu1 %1163, %v359_v11   ;;  %v357_v14 = vld [vmem:[%s1542_s2 + $0x50] sm:$0xff]  ;;  %v358_v15 = vld [vmem:[%s1542_s2 + $0x58] sm:$0xff]  ;;  %v1168_v17 = vld [vmem:[%s1541_s1 + $0x20] sm:$0xff]   ;;  %s1182_s25 = sshll.u32 %s1242_s24, 4  ;;  %s1183_s25 = int_to_ptr.vmem [resolvable:$false] %s1182_s25 }
  0x1a   : > { %v330_v6 = vld [vmem:[%s328_s28] sm:$0xf]  ;;  %v1167_v16 = vld [vmem:[%s1541_s1 + $0x18] sm:$0xff]   ;;  %v356_v19 = vld [vmem:[%s1542_s2 + $0x48] sm:$0xff]  ;;  %s323_s28 = sand.u32 1, %s1230_s12   ;;  %s1184_s8 = scalar_lea.vmem %s1183_s25, 32 }
  0x1b   : > { %v513_v7 = vand.u32 %v511_v4, %v330_v6  ;;  %v355_v18 = vld [vmem:[%s1542_s2 + $0x40] sm:$0xff]  ;;  %v353_v20 = vld [vmem:[%s1542_s2 + $0x30] sm:$0xff]  ;;  %v354_v21 = vld [vmem:[%s1542_s2 + $0x38] sm:$0xff]  ;;  %s324_s30 = scalar_lea.vmem [#allocation3], %s323_s28  ;;  %s941_s22 = scalar_lea.sflag [#allocation4], %s323_s28 }
  0x1c   : > { %v1169_v22 = vld [vmem:[%s1541_s1 + $0x28] sm:$0xff]   ;;  %v1170_v23 = vld [vmem:[%s1541_s1 + $0x30] sm:$0xff]   ;;  %v351_v24 = vld [vmem:[%s1542_s2 + $0x20] sm:$0xff]  ;;  %s953_s10 = sshll.u32 %s324_s30, 4  ;;  %s954_s10 = int_to_ptr.vmem [resolvable:$true] %s953_s10 }
  0x1d   : > { %1067 = vmatprep.subr.bf16.mxu0 %v513_v7  ;;  %440 = vperm.xlu0 %1162, %v362_v12   ;;  %v352_v25 = vld [vmem:[%s1542_s2 + $0x28] sm:$0xff]  ;;  %v349_v26 = vld [vmem:[%s1542_s2 + $0x10] sm:$0xff]  ;;  %v350_v27 = vld [vmem:[%s1542_s2 + $0x18] sm:$0xff]  ;;  %s1178_s23 = scalar_lea.vmem %s954_s10, 16  ;;  %p1185_p0 = scmp.lt.s32.totalorder %s954_s10, %s1183_s25 }
  0x1e   : > { %1068 = vmatpush3.bf16.msra.mxu0 %v513_v7  ;;  %430 = vperm.xlu1 %1163, %v360_v13   ;;  %v1171_v28 = vld [vmem:[%s1541_s1 + $0x38] sm:$0xff]   ;;  %v347_v29 = vld [vmem:[%s1542_s2] sm:$0xff]  ;;  %v348_v30 = vld [vmem:[%s1542_s2 + $0x8] sm:$0xff]  ;;  %p1179_p11 = scmp.ne.s32.totalorder %s954_s10, %s1178_s23  ;;  %p1186_p1 = scmp.lt.s32.totalorder %s1184_s8, %s1178_s23 }
  0x1f   : > { %v650_v31 = vld [vmem:[%s1544_s4 + $0x30] sm:$0xff]  ;;  %v651_v32 = vld [vmem:[%s1544_s4 + $0x38] sm:$0xff]  ;;  %v648_v33 = vld [vmem:[%s1544_s4 + $0x20] sm:$0xff] }
  0x20   : > { %v649_v34 = vld [vmem:[%s1544_s4 + $0x28] sm:$0xff]  ;;  %v646_v35 = vld [vmem:[%s1544_s4 + $0x10] sm:$0xff]  ;;  %v647_v36 = vld [vmem:[%s1544_s4 + $0x18] sm:$0xff]  ;;  %p1180_p12 = pnand %p1179_p11, %p1334_p5  ;;  %p1187_p2 = por %p1186_p1, %p1185_p0 }
  0x21   : > { %1070 = vmatmul.mubr.msk.bf16.vlgmr.msra.gmra.mxu0 %vm483_vm2, %v1165_v8  ;;  %415 = vperm.xlu0 %1162, %v357_v14   ;;  %v644_v37 = vld [vmem:[%s1544_s4] sm:$0xff]  ;;  %v645_v38 = vld [vmem:[%s1544_s4 + $0x8] sm:$0xff]  ;;  %v799_v41 = vld [vmem:[%s1546_s6 + $0x10] sm:$0xff] }
  0x22   : > { %1073 = vmatprep.mubr.msk.bf16.mxu0 %vm483_vm2, %v1166_v10  ;;  %420 = vperm.xlu1 %1163, %v358_v15   ;;  %v797_v39 = vld [vmem:[%s1546_s6] sm:$0xff]  ;;  %v798_v40 = vld [vmem:[%s1546_s6 + $0x8] sm:$0xff]  ;;  %v800_v42 = vld [vmem:[%s1546_s6 + $0x18] sm:$0xff]  ;;  %p1181_p13 = pneg %p1180_p12 }
  0x23   : > { %v891_v43 = vld [vmem:[%s1547_s7] sm:$0xff]  ;;  %v892_v44 = vld [vmem:[%s1547_s7 + $0x8] sm:$0xff]  ;;  %v893_v45 = vld [vmem:[%s1547_s7 + $0x10] sm:$0xff] }
  0x24   : > { %v894_v46 = vld [vmem:[%s1547_s7 + $0x18] sm:$0xff]  ;;  %v928_v47 = vld [vmem:[#allocation2] sm:$0x1]  ;;  %p1188_p3 = pnand %p1187_p2, %p1181_p13 }
  0x25   : > { %405 = vperm.xlu0 %1162, %v355_v18   ;;  %v1172_v48 = vld [vmem:[%s1543_s3] sm:$0xff]  }
  0x26   : > { %410 = vperm.xlu1 %1163, %v356_v19   ;;  %1101 = vmatprep.mubr.bf16.mxu1 %v1172_v48 }
  0x29   : > { %1074 = vmatmul.mubr.msk.bf16.gmra.mxu0 %vm483_vm2, %v1167_v16  ;;  %395 = vperm.xlu0 %1162, %v353_v20  }
  0x2a   : > { %1077 = vmatprep.mubr.msk.bf16.mxu0 %vm483_vm2, %v1168_v17  ;;  %400 = vperm.xlu1 %1163, %v354_v21  }
  0x2d   : > { %385 = vperm.xlu0 %1162, %v351_v24  }
  0x2e   : > { %390 = vperm.xlu1 %1163, %v352_v25  }
  0x31   : > { %1078 = vmatmul.mubr.msk.bf16.gmra.mxu0 %vm483_vm2, %v1169_v22  ;;  %375 = vperm.xlu0 %1162, %v349_v26  }
  0x32   : > { %1081 = vmatprep.mubr.msk.bf16.mxu0 %vm483_vm2, %v1170_v23  ;;  %380 = vperm.xlu1 %1163, %v350_v27  }
  0x35   : > { %365 = vperm.xlu0 %1162, %v347_v29  }
  0x36   : > { %370 = vperm.xlu1 %1163, %v348_v30  }
  0x39   : > { %1082 = vmatmul.mubr.msk.bf16.gmra.mxu0 %vm483_vm2, %v1171_v28  ;;  %684 = vperm.xlu0 %1162, %v650_v31  }
  0x3a   : > { %689 = vperm.xlu1 %1163, %v651_v32  }
  0x3d   : > { %674 = vperm.xlu0 %1162, %v648_v33  }
  0x3e   : > { %679 = vperm.xlu1 %1163, %v649_v34  }
  0x41   : > { %664 = vperm.xlu0 %1162, %v646_v35  }
  0x42   : > { %669 = vperm.xlu1 %1163, %v647_v36  }
  0x45   : > { %654 = vperm.xlu0 %1162, %v644_v37  }
  0x46   : > { %659 = vperm.xlu1 %1163, %v645_v38  }
  0x49   : > { %803 = vperm.xlu0 %1162, %v797_v39  }
  0x4a   : > { %808 = vperm.xlu1 %1163, %v798_v40  }
  0x4d   : > { %813 = vperm.xlu0 %1162, %v799_v41  }
  0x4e   : > { %818 = vperm.xlu1 %1163, %v800_v42  }
  0x51   : > { %897 = vperm.xlu0 %1162, %v891_v43  }
  0x52   : > { %902 = vperm.xlu1 %1163, %v892_v44  }
  0x55   : > { %907 = vperm.xlu0 %1162, %v893_v45  }
  0x56   : > { %912 = vperm.xlu1 %1163, %v894_v46  }
  0x59   : > { %931 = vperm.xlu0 %1162, %v928_v47  }
  0x94   : > { %v426_v53 = vpop.permute.xlu1 %425  ;;  %v436_v55 = vpop.permute.xlu0 %435 }
  0x98   : > { %v441_v60 = vpop.permute.xlu0 %440 }
  0x99   : > { %v431_v58 = vpop.permute.xlu1 %430 }
  0x9c   : > { %v416_v1 = vpop.permute.xlu0 %415 }
  0x9d   : > { %v421_v63 = vpop.permute.xlu1 %420 }
  0xa0   : > { %v406_v7 = vpop.permute.xlu0 %405 }
  0xa1   : > { %v411_v4 = vpop.permute.xlu1 %410 }
  0xa4   : > { %v396_v21 = vpop.permute.xlu0 %395 }
  0xa5   : > { %v401_v16 = vpop.permute.xlu1 %400 }
  0xa8   : > { %v386_v31 = vpop.permute.xlu0 %385 }
  0xa9   : > { %v391_v27 = vpop.permute.xlu1 %390 }
  0xac   : > { %v376_v40 = vpop.permute.xlu0 %375 }
  0xad   : > { %v381_v37 = vpop.permute.xlu1 %380 }
  0xb1   : > { %v371_v46 = vpop.permute.xlu1 %370 }
  0xe1   : > { %v1480_v49 = vpop.f32.mrf.mxu0 }
  0xe2   : > { %v558_v44 = vadd.f32 %v1480_v49, %v376_v40  ;;  %v1173_v49 = vld [vmem:[%s1543_s3 + $0x8] sm:$0xff]  }
  0xe3   : > { %v1482_v50 = vpop.f32.mrf.mxu0 }
  0xe5   : > { %v1072_v51 = vpop.f32.mrf.mxu0 }
  0xe6   : > { %v561_v41 = vadd.f32 %v1072_v51, %v381_v37 }
  0xe7   : > { %v1484_v52 = vpop.f32.mrf.mxu0 }
  0xe8   : > { %v615_v47 = vmax.f32 %v561_v41, 0.0  ;;  %v553_v48 = vadd.f32 %v1484_v52, %v371_v46  ;;  %v1174_v52 = vld [vmem:[%s1543_s3 + $0x10] sm:$0xff]  }
  0xe9   : > { %v1075_v54 = vpop.f32.mrf.mxu0 }
  0xea   : > { %v574_v32 = vadd.f32 %v1075_v54, %v396_v21  ;;  %v366_v54 = vpop.permute.xlu0 %365  ;;  %v613_v51 = vmax.f32 %v553_v48, 0.0 }
  0xeb   : > { %v565_v56 = vpop.f32.mrf.mxu0 }
  0xec   : > { %v618_v38 = vmax.f32 %v574_v32, 0.0  ;;  %v566_v39 = vadd.f32 %v565_v56, %v386_v31  ;;  %v550_v56 = vadd.f32 %v1482_v50, %v366_v54  ;;  %v1175_v50 = vld [vmem:[%s1543_s3 + $0x18] sm:$0xff]  }
  0xed   : > { %v1076_v57 = vpop.f32.mrf.mxu0 }
  0xee   : > { %v577_v28 = vadd.f32 %v1076_v57, %v401_v16  ;;  %v616_v45 = vmax.f32 %v566_v39, 0.0 }
  0xef   : > { %v568_v59 = vpop.f32.mrf.mxu0 }
  0xf0   : > { %v619_v34 = vmax.f32 %v577_v28, 0.0  ;;  %v569_v35 = vadd.f32 %v568_v59, %v391_v27 }
  0xf1   : > { %v1079_v61 = vpop.f32.mrf.mxu0 }
  0xf2   : > { %v590_v17 = vadd.f32 %v1079_v61, %v416_v1  ;;  %v639_v42 = vpack.c.bf16 %v619_v34, %v618_v38  ;;  %v617_v43 = vmax.f32 %v569_v35, 0.0  ;;  %v690_v61 = vpop.permute.xlu1 %689 }
  0xf3   : > { %v581_v62 = vpop.f32.mrf.mxu0 }
  0xf4   : > { %v622_v25 = vmax.f32 %v590_v17, 0.0  ;;  %v582_v26 = vadd.f32 %v581_v62, %v406_v7 }
  0xf5   : > { %v1080_v0 = vpop.f32.mrf.mxu0 }
  0xf6   : > { %v593_v12 = vadd.f32 %v1080_v0, %v421_v63  ;;  %v620_v33 = vmax.f32 %v582_v26, 0.0  ;;  %v685_v63 = vpop.permute.xlu0 %684 }
  0xf7   : > { %v584_v2 = vpop.f32.mrf.mxu0 }
  0xf8   : > { %v623_v22 = vmax.f32 %v593_v12, 0.0  ;;  %v585_v23 = vadd.f32 %v584_v2, %v411_v4  ;;  %v680_v2 = vpop.permute.xlu1 %679 }
  0xf9   : > { %v1083_v3 = vpop.f32.mrf.mxu0 }
  0xfa   : > { %v606_v6 = vadd.f32 %v1083_v3, %v436_v55  ;;  %v641_v29 = vpack.c.bf16 %v623_v22, %v622_v25  ;;  %v621_v30 = vmax.f32 %v585_v23, 0.0  ;;  %v614_v55 = vmax.f32 %v558_v44, 0.0  ;;  %v675_v4 = vpop.permute.xlu0 %674 }
  0xfb   : > { %v597_v5 = vpop.f32.mrf.mxu0 }
  0xfc   : > { %v598_v9 = vadd.f32 %v597_v5, %v426_v53  ;;  %v626_v13 = vmax.f32 %v606_v6, 0.0  ;;  %v640_v36 = vpack.c.bf16 %v621_v30, %v620_v33  ;;  %v638_v53 = vpack.c.bf16 %v617_v43, %v616_v45  ;;  %v1177_v33 = vld [vmem:[%s1545_s5 + $0x8] sm:$0xff]  }
  0xfd   : > { %v1084_v8 = vpop.f32.mrf.mxu0  ;;  %v637_v57 = vpack.c.bf16 %v615_v47, %v614_v55 }
  0xfe   : > { %v609_v10 = vadd.f32 %v1084_v8, %v441_v60  ;;  %v624_v18 = vmax.f32 %v598_v9, 0.0  ;;  %v1176_v60 = vld [vmem:[%s1545_s5] sm:$0xff]   ;;  %v670_v8 = vpop.permute.xlu1 %669  ;;  %v665_v12 = vpop.permute.xlu0 %664 }
  0xff   : > { %v600_v11 = vpop.f32.mrf.mxu0  ;;  %1117 = vmatprep.mubr.msk.bf16.mxu0 %vm831_vm3, %v1176_v60  ;;  %v934_v60 = vlaneseq }
 0x100   : > { %v627_v14 = vmax.f32 %v609_v10, 0.0  ;;  %v601_v15 = vadd.f32 %v600_v11, %v431_v58  ;;  %v612_v58 = vmax.f32 %v550_v56, 0.0 }
 0x102   : > { %v625_v19 = vmax.f32 %v601_v15, 0.0  ;;  %v643_v20 = vpack.c.bf16 %v627_v14, %v626_v13  ;;  %v636_v59 = vpack.c.bf16 %v613_v51, %v612_v58  ;;  %v660_v22 = vpop.permute.xlu1 %659  ;;  %v655_v26 = vpop.permute.xlu0 %654 }
 0x104   : > { %v642_v24 = vpack.c.bf16 %v625_v19, %v624_v18  ;;  %1085 = vmatprep.subr.bf16.mxu1 %v643_v20 }
 0x105   : > { %1086 = vmatpush3.bf16.msra.mxu1 %v643_v20 }
 0x106   : > { %1087 = vmatprep.subr.bf16.mxu1 %v642_v24  ;;  %v804_v34 = vpop.permute.xlu0 %803  ;;  %v809_v35 = vpop.permute.xlu1 %808 }
 0x109   : > { %1088 = vmatpush3.bf16.msra.mxu1 %v642_v24 }
 0x10a   : > { %1089 = vmatprep.subr.bf16.mxu1 %v641_v29  ;;  %v819_v38 = vpop.permute.xlu1 %818 }
 0x10d   : > { %1090 = vmatpush3.bf16.msra.mxu1 %v641_v29 }
 0x10e   : > { %1091 = vmatprep.subr.bf16.mxu1 %v640_v36  ;;  %v903_v48 = vpop.permute.xlu1 %902 }
 0x111   : > { %1092 = vmatpush3.bf16.msra.mxu1 %v640_v36  ;;  %v814_v36 = vpop.permute.xlu0 %813 }
 0x112   : > { %1093 = vmatprep.subr.bf16.mxu1 %v639_v42 }
 0x115   : > { %1094 = vmatpush3.bf16.msra.mxu1 %v639_v42  ;;  %v898_v43 = vpop.permute.xlu0 %897 }
 0x116   : > { %1095 = vmatprep.subr.bf16.mxu1 %v638_v53 }
 0x119   : > { %1096 = vmatpush3.bf16.msra.mxu1 %v638_v53  ;;  %v908_v51 = vpop.permute.xlu0 %907 }
 0x11a   : > { %1097 = vmatprep.subr.bf16.mxu1 %v637_v57 }
 0x11d   : > { %1098 = vmatpush3.bf16.msra.mxu1 %v637_v57 }
 0x11e   : > { %1099 = vmatprep.subr.bf16.mxu1 %v636_v59 }
 0x121   : > { %1100 = vmatpush3.bf16.msra.mxu1 %v636_v59 }
 0x124   : > { %1102 = vmatmul.mubr.bf16.vlgmr.msra.gmra.mxu1 %v1173_v49  ;;  %v913_v49 = vpop.permute.xlu1 %912 }
 0x125   : > { %1105 = vmatprep.mubr.bf16.mxu1 %v1174_v52 }
 0x12c   : > { %1106 = vmatmul.mubr.bf16.gmra.mxu1 %v1175_v50 }
 0x1e4   : > { %v1103_v62 = vpop.f32.mrf.mxu1 }
 0x1e5   : > { %v759_v18 = vadd.f32 %v1103_v62, %v665_v12 }
 0x1e6   : > { %v750_v0 = vpop.f32.mrf.mxu1 }
 0x1e7   : > { %v783_v27 = vmax.f32 %v759_v18, 0.0  ;;  %v751_v28 = vadd.f32 %v750_v0, %v655_v26 }
 0x1e8   : > { %v1104_v1 = vpop.f32.mrf.mxu1 }
 0x1e9   : > { %v762_v14 = vadd.f32 %v1104_v1, %v670_v8  ;;  %v781_v31 = vmax.f32 %v751_v28, 0.0 }
 0x1ea   : > { %v753_v3 = vpop.f32.mrf.mxu1 }
 0x1eb   : > { %v784_v23 = vmax.f32 %v762_v14, 0.0  ;;  %v754_v24 = vadd.f32 %v753_v3, %v660_v22 }
 0x1ec   : > { %v1107_v5 = vpop.f32.mrf.mxu1 }
 0x1ed   : > { %v775_v7 = vadd.f32 %v1107_v5, %v685_v63  ;;  %v794_v29 = vpack.c.bf16 %v784_v23, %v783_v27  ;;  %v782_v30 = vmax.f32 %v754_v24, 0.0  ;;  %v935_v63 = vshrl.u32 %v934_v60, 7 }
 0x1ee   : > { %v766_v6 = vpop.f32.mrf.mxu1 }
 0x1ef   : > { %v767_v10 = vadd.f32 %v766_v6, %v675_v4  ;;  %v787_v15 = vmax.f32 %v775_v7, 0.0  ;;  %v793_v32 = vpack.c.bf16 %v782_v30, %v781_v31  ;;  %v932_v4 = vpop.permute.xlu0 %931 }
 0x1f0   : > { %v1108_v9 = vpop.f32.mrf.mxu1 }
 0x1f1   : > { %v778_v11 = vadd.f32 %v1108_v9, %v690_v61  ;;  %v785_v19 = vmax.f32 %v767_v10, 0.0 }
 0x1f2   : > { %v769_v13 = vpop.f32.mrf.mxu1 }
 0x1f3   : > { %v788_v16 = vmax.f32 %v778_v11, 0.0  ;;  %v770_v17 = vadd.f32 %v769_v13, %v680_v2  ;;  %v936_v2 = vsub.s32 0, %v935_v63 }
 0x1f5   : > { %v796_v20 = vpack.c.bf16 %v788_v16, %v787_v15  ;;  %v786_v21 = vmax.f32 %v770_v17, 0.0  ;;  %v937_v6 = vrot.slane %v932_v4, %v936_v2 }
 0x1f7   : > { %v795_v25 = vpack.c.bf16 %v786_v21, %v785_v19  ;;  %1109 = vmatprep.subr.bf16.mxu0 %v796_v20 }
 0x1f8   : > { %1110 = vmatpush3.bf16.msra.mxu0 %v796_v20 }
 0x1f9   : > { %1111 = vmatprep.subr.bf16.mxu0 %v795_v25 }
 0x1fc   : > { %1112 = vmatpush3.bf16.msra.mxu0 %v795_v25 }
 0x1fd   : > { %1113 = vmatprep.subr.bf16.mxu0 %v794_v29 }
 0x200   : > { %1114 = vmatpush3.bf16.msra.mxu0 %v794_v29 }
 0x201   : > { %1115 = vmatprep.subr.bf16.mxu0 %v793_v32 }
 0x204   : > { %1116 = vmatpush3.bf16.msra.mxu0 %v793_v32 }
 0x207   : > { %1118 = vmatmul.mubr.msk.bf16.vlgmr.msra.gmra.mxu0 %vm831_vm3, %v1177_v33 }
 0x2c7   : > { %v1119_v37 = vpop.f32.mrf.mxu0 }
 0x2c8   : > { %v881_v42 = vadd.f32 %v1119_v37, %v814_v36 }
 0x2c9   : > { %v872_v39 = vpop.f32.mrf.mxu0 }
 0x2ca   : > { %v873_v40 = vadd.f32 %v872_v39, %v804_v34  ;;  %v889_v53 = vmax.f32 %v881_v42, 0.0 }
 0x2cb   : > { %v1120_v41 = vpop.f32.mrf.mxu0 }
 0x2cc   : > { %v887_v45 = vmax.f32 %v873_v40, 0.0  ;;  %v884_v46 = vadd.f32 %v1120_v41, %v819_v38  ;;  %v917_v58 = vmul.f32 %v908_v51, %v889_v53 }
 0x2cd   : > { %v875_v44 = vpop.f32.mrf.mxu0 }
 0x2ce   : > { %v876_v47 = vadd.f32 %v875_v44, %v809_v35  ;;  %v915_v55 = vmul.f32 %v898_v43, %v887_v45  ;;  %v890_v56 = vmax.f32 %v884_v46, 0.0 }
 0x2d0   : > { %v888_v54 = vmax.f32 %v876_v47, 0.0  ;;  %v918_v52 = vmul.f32 %v913_v49, %v890_v56 }
 0x2d2   : > { %v916_v57 = vmul.f32 %v903_v48, %v888_v54 }
 0x2d4   : > { %v919_v59 = vadd.f32 %v916_v57, %v915_v55 }
 0x2d6   : > { %v920_v50 = vadd.f32 %v919_v59, %v917_v58 }
 0x2d8   : > { %v921_v61 = vadd.f32 %v920_v50, %v918_v52 }
 0x2da   : > { %v922_v62 = vrot.slane %v921_v61, 4 }
 0x2dc   : > { %v923_v0 = vadd.f32 %v922_v62, %v921_v61 }
 0x2de   : > { %v924_v1 = vrot.slane %v923_v0, 2 }
 0x2e0   : > { %v925_v3 = vadd.f32 %v924_v1, %v923_v0 }
 0x2e2   : > { %v926_v5 = vrot.slane %v925_v3, 1 }
 0x2e4   : > { %v927_v7 = vadd.f32 %v926_v5, %v925_v3 }
 0x2e6   : > { %v938_v8 = vadd.f32 %v937_v6, %v927_v7 }
 0x2e8   : > { %939 = vst [vmem:[%s324_s30] sm:$0x1] %v938_v8 }
 0x2e9   : > { %1191 = shalt.err (!%p1188_p3)
}
 0x2ea   : > { %s1192_s26 = scalar_lea.hbm %s951_s18, 16  ;;  %s1196_s29 = scalar_lea.hbm %s1549_s9, 32 }
 0x2eb   : > { %p1193_p4 = scmp.ne.s32.totalorder %s951_s18, %s1192_s26  ;;  %p1197_p9 = scmp.lt.s32.totalorder %s951_s18, %s1549_s9 }
 0x2ec   : > { %p1198_p10 = scmp.lt.s32.totalorder %s1196_s29, %s1192_s26 }
 0x2ed   : > { %p1194_p7 = pnand %p1193_p4, %p1334_p5 }
 0x2ee   : > { %p1199_p11 = por %p1198_p10, %p1197_p9 }
 0x2ef   : > { %p1195_p8 = pneg %p1194_p7 }
 0x2f1   : > { %p1200_p12 = pnand %p1199_p11, %p1195_p8 }
 0x2f3   : > { %1203 = shalt.err (!%p1200_p12)
}
 0x2f4   : > { %1121 = dma.vmem_to_hbm [thread:$0]  (%p1334_p5), %s954_s10, 16, %s951_s18, %s941_s22  }
 0x2f5 PF: > { %p1127_p13 = scmp.ge.s32.totalorder %s1238_s14, 2  ;;  %s965_s17 = sand.u32 1, %s1226_s11  }
 0x2f6   : > { %s966_s23 = scalar_lea.sflag [#allocation4], %s965_s17 }
 0x2f7   : > { %p1124_p0 = pnand %p1127_p13, %p1338_p6 }
 0x2f9   : > { %p1125_p1 = pneg %p1124_p0 }
 0x2fb   : > { %1221 = dma.done.wait (%p1125_p1), %s966_s23, 16  }
 0x2fc   : > { %1223 = vsyncadd (%p1125_p1), %s966_s23, 4294967280  ;;  %p21_p2 = scmp.ge.s32.totalorder %s1321_s16, 4   ;;  %s1552_s11 = smov %s1230_s12 }
 0x2fd   : > { %s1553_s12 = smov %s1234_s13  ;;  %s1554_s13 = smov %s1332_s19 }
 0x2fe   : > { %s1555_s14 = smov %s1321_s16  ;;  %23 = sbr.rel (!%p21_p2) target bundleno = 6 (0x6), region = 91 }
 0x303   :  { %970 = vsyncpa [#allocation4], 1 }
 0x304   :  { %972 = vsyncpa [#allocation4 + $0x1], 1 }

</bundles_post_ra>
